<compile_context>
chip_gen: v5e
topology: v5e:2x2
jax: 0.10.0
libtpu: 0.0.40
codegen_flags: <defaults>
</compile_context>

<pallas_src>
import math
import numpy as np
import jax
import jax.numpy as jnp
from jax.experimental import pallas as pl
from jax.experimental.pallas import tpu as pltpu

# ---------------- hyperparameters (copied from the PyTorch class body) -------
NUM_FILTERS = 40
FILTER_LENGTH = 7
T_LENGTH = 10
POOL_WINDOW_MS = 40
STRIDE_WINDOW_MS = 10
NUM_CHAN = 9
DEPTH = 1
SR = 100
CUTOFF = 10

POOL_WINDOW = int(np.rint((100 - FILTER_LENGTH + 1) * POOL_WINDOW_MS / 1000))
STRIDE_WINDOW = int(np.rint((100 - FILTER_LENGTH + 1) * STRIDE_WINDOW_MS / 1000))
if POOL_WINDOW % 2 == 0:
    POOL_WINDOW -= 1
if STRIDE_WINDOW % 2 == 0:
    STRIDE_WINDOW -= 1
T_CONV = T_LENGTH - FILTER_LENGTH + 1                       # 4
OUTPUT_SIZE = int(np.floor((T_LENGTH - FILTER_LENGTH + 1 - POOL_WINDOW)
                           / STRIDE_WINDOW + 1))            # 2
N_CLASSES = 25
N_OUT_PAD = 128                                             # lane-dense output store
BN_EPS = 1e-5
IN_DIM = NUM_CHAN * T_LENGTH                                # 90
HID = NUM_FILTERS * T_CONV                                  # 160
assert STRIDE_WINDOW == 1  # pooling below assumes stride 1 (true for these hparams)


# ---------------- deterministic sinc filter construction (glue, plain numpy) --
def make_sinc_filters(n_filt, filt_dim, fs, cutoff):
    edges = np.linspace(1.0, float(cutoff), n_filt + 1)
    b1 = edges[:-1] / fs                       # learnable low cutoffs (normalised)
    band = (edges[1:] - edges[:-1]) / fs       # learnable bandwidths (normalised)
    min_freq, min_band = 1.0, 1.0
    beg = np.abs(b1) + min_freq / fs
    end = beg + (np.abs(band) + min_band / fs)

    n_half = (filt_dim - 1) // 2
    t_right = np.linspace(1, n_half, n_half) / fs
    n = np.linspace(0, filt_dim, filt_dim)
    window = 0.54 - 0.46 * np.cos(2 * np.pi * n / filt_dim)   # Hamming

    def sinc_vec(f_hz):
        y_right = np.sin(2 * np.pi * f_hz * t_right) / (2 * np.pi * f_hz * t_right)
        return np.concatenate([y_right[::-1], [1.0], y_right])

    filters = np.zeros((n_filt, filt_dim), np.float32)
    for i in range(n_filt):
        lp1 = 2 * beg[i] * sinc_vec(beg[i] * fs)
        lp2 = 2 * end[i] * sinc_vec(end[i] * fs)
        bp = lp2 - lp1
        bp = bp / np.max(bp)
        filters[i] = (bp * window).astype(np.float32)
    return jnp.asarray(filters, jnp.float32)


# ---------------- the Pallas kernel ------------------------------------------
# x block:   (BT, 90)   -- batch on the sublane dimension, features on lanes
# out block: (BT, 128)  -- classes zero-padded 25 -> 128 for lane-dense stores
def _sinc_fused_kernel(w1_ref, b1_ref, w2_ref, b2_ref, x_ref, o_ref):
    xb = x_ref[...].astype(jnp.bfloat16)                              # (BT, 90)
    h = jnp.dot(xb, w1_ref[...], preferred_element_type=jnp.float32)  # (BT, 160)
    h = jnp.maximum(h + b1_ref[...], 0.0).astype(jnp.bfloat16)
    o_ref[...] = (jnp.dot(h, w2_ref[...], preferred_element_type=jnp.float32)
                  + b2_ref[...])                                      # (BT, 128)


# ---------------- wrapper -----------------------------------------------------
def _round_up(v, m):
    return ((v + m - 1) // m) * m


def _pick_block_b(batch, max_block):
    # >= 2 grid steps when possible so v7x's two TensorCores both get work;
    # otherwise as big as allowed (fewer grid steps -> less per-step overhead).
    half = _round_up(max(1, (batch + 1) // 2), 8)
    return max(8, min(max_block, half))


def sinc_drift_forward(x, folded, *, max_block_b=2048):
    """x: (B, 9, 10) float32 -> (B, 25) float32 logits."""
    B = x.shape[0]
    x2 = x.reshape(B, IN_DIM)                     # zero-copy metadata reshape
    block_b = _pick_block_b(B, max_block_b)
    n_tiles = pl.cdiv(B, block_b)                 # ragged tail masked by Pallas

    const = lambda i: (0, 0)
    flops = 2 * B * (IN_DIM * HID + HID * N_OUT_PAD)
    w_bytes = (IN_DIM * HID + HID * N_OUT_PAD) * 2 + (HID + N_OUT_PAD) * 4
    bytes_accessed = B * IN_DIM * x2.dtype.itemsize + B * N_OUT_PAD * 4 + w_bytes

    out = pl.pallas_call(
        _sinc_fused_kernel,
        out_shape=jax.ShapeDtypeStruct((B, N_OUT_PAD), jnp.float32),
        grid=(n_tiles,),
        in_specs=[
            pl.BlockSpec((IN_DIM, HID), const),                  # W1^T (90, 160) bf16
            pl.BlockSpec((1, HID), const),                       # b1   (1, 160)  f32
            pl.BlockSpec((HID, N_OUT_PAD), const),               # W2^T (160,128) bf16
            pl.BlockSpec((1, N_OUT_PAD), const),                 # bfc  (1, 128)  f32
            pl.BlockSpec((block_b, IN_DIM), lambda i: (i, 0)),   # x rows
        ],
        out_specs=pl.BlockSpec((block_b, N_OUT_PAD), lambda i: (i, 0)),
        compiler_params=pltpu.CompilerParams(
            dimension_semantics=("parallel",),
            vmem_limit_bytes=32 * 1024 * 1024),
        cost_estimate=pl.CostEstimate(flops=flops, transcendentals=0,
                                      bytes_accessed=bytes_accessed),
    )(folded["w1t"], folded["b1"], folded["w2t"], folded["b2"], x2)
    return out[:, :N_CLASSES]                     # drop class-dim padding (tiny)


# ---------------- deterministic parameter init (raw module params) ------------
def _fold_bn(gamma, beta, mean, var):
    scale = gamma / jnp.sqrt(var + BN_EPS)
    shift = beta - mean * scale
    return scale.astype(jnp.float32), shift.astype(jnp.float32)


def init_params(key):
    kdw, kpw, kfw, kfb, kbn1, kbn2 = jax.random.split(key, 6)

    # BatchNorm2d(1) (eval): deterministic scalar stats.
    g0, be0, rm0, rv0 = 1.1, 0.05, 0.02, 0.9
    s0 = g0 / math.sqrt(rv0 + BN_EPS)
    bn0 = jnp.array([s0, be0 - rm0 * s0], jnp.float32)

    # BatchNorm2d(40) after sinc conv.
    v1 = jax.random.normal(kbn1, (4, NUM_FILTERS), jnp.float32) * 0.1
    sb, shb = _fold_bn(1.0 + v1[0], v1[1], v1[2], 1.0 + jnp.abs(v1[3]))
    # BatchNorm2d(40) after separable conv.
    v2 = jax.random.normal(kbn2, (4, NUM_FILTERS), jnp.float32) * 0.1
    s2, sh2 = _fold_bn(1.0 + v2[0], v2[1], v2[2], 1.0 + jnp.abs(v2[3]))

    return dict(
        bn0=bn0,
        filt=make_sinc_filters(NUM_FILTERS, FILTER_LENGTH, SR, CUTOFF),
        bnb_s=sb.reshape(NUM_FILTERS, 1, 1),
        bnb_b=shb.reshape(NUM_FILTERS, 1, 1),
        dw=jax.random.normal(kdw, (NUM_FILTERS, NUM_CHAN), jnp.float32) * 0.1,
        pw=jax.random.normal(kpw, (NUM_FILTERS, NUM_FILTERS), jnp.float32) * 0.1,
        bn2_s=s2.reshape(NUM_FILTERS, 1),
        bn2_b=sh2.reshape(NUM_FILTERS, 1),
        wfc=jax.random.normal(
            kfw, (N_CLASSES, NUM_FILTERS * DEPTH * OUTPUT_SIZE), jnp.float32) * 0.05,
        bfc=jax.random.normal(kfb, (N_CLASSES,), jnp.float32) * 0.05,
    )


# ---------------- float64 numpy forward pieces (folding + gold reference) -----
def _pre_relu_batch_np(x_b, p):
    """(N, 9, 10) -> (N, 160) pre-ReLU features, flatten order f*T_CONV + t."""
    xb = x_b * p["bn0"][0] + p["bn0"][1]
    y = np.zeros((x_b.shape[0], NUM_FILTERS, NUM_CHAN, T_CONV), x_b.dtype)
    for k in range(FILTER_LENGTH):
        y = y + p["filt"][None, :, k, None, None] * xb[:, None, :, k:k + T_CONV]
    y = y * p["bnb_s"][None] + p["bnb_b"][None]
    dw = np.einsum("fc,nfct->nft", p["dw"], y)
    pw = np.einsum("of,nft->not", p["pw"], dw)
    z = pw * p["bn2_s"][None] + p["bn2_b"][None]
    return z.reshape(x_b.shape[0], -1)


def _post_linear_np(z_flat, p):
    """(N, 160) -> (N, 25), AvgPool(1,3) stride 1 + fc (bias NOT included)."""
    z = z_flat.reshape(-1, NUM_FILTERS, T_CONV)
    pool = np.zeros((z.shape[0], NUM_FILTERS, OUTPUT_SIZE), z.dtype)
    for k in range(POOL_WINDOW):
        pool = pool + z[:, :, k:k + OUTPUT_SIZE]
    pool = pool / POOL_WINDOW
    # PyTorch flatten of (B, 40, 1, 2): index = f*2 + t
    return pool.reshape(z.shape[0], -1) @ p["wfc"].T


def reference_forward_np(x_np, p):
    z = np.maximum(_pre_relu_batch_np(x_np, p), 0.0)
    return _post_linear_np(z, p) + p["bfc"][None, :]


def fold_params(raw):
    """Fold the full linear chain into (W1^T, b1, W2^T padded, bfc padded)."""
    p = {k: np.asarray(v, np.float64) for k, v in raw.items()}
    b1 = _pre_relu_batch_np(np.zeros((1, NUM_CHAN, T_LENGTH)), p)[0]          # (160,)
    basis = np.eye(IN_DIM).reshape(IN_DIM, NUM_CHAN, T_LENGTH)
    w1t = _pre_relu_batch_np(basis, p) - b1[None, :]                          # (90, 160)
    w2t = np.zeros((HID, N_OUT_PAD), np.float64)                              # (160, 128)
    w2t[:, :N_CLASSES] = _post_linear_np(np.eye(HID), p)
    b2 = np.zeros((N_OUT_PAD,), np.float64)
    b2[:N_CLASSES] = p["bfc"]
    return dict(
        w1t=jnp.asarray(w1t, jnp.bfloat16),
        b1=jnp.asarray(b1.reshape(1, HID), jnp.float32),
        w2t=jnp.asarray(w2t, jnp.bfloat16),
        b2=jnp.asarray(b2.reshape(1, N_OUT_PAD), jnp.float32),
    )


# ---------------- main ---------------------------------------------------------
if __name__ == "__main__":
    B = 300                               # ragged tail + 2 "parallel" grid tiles
    key = jax.random.PRNGKey(0)
    kx, kp = jax.random.split(key)
    x = jax.random.normal(kx, (B, NUM_CHAN, T_LENGTH), jnp.float32)

    raw = init_params(kp)
    folded = fold_params(raw)

    out = jax.block_until_ready(sinc_drift_forward(x, folded))
    assert out.shape == (B, N_CLASSES), out.shape

    ref = reference_forward_np(
        np.asarray(x, np.float64),
        {k: np.asarray(v, np.float64) for k, v in raw.items()})
    # bf16 weights / activations inside the kernel -> relaxed tolerance vs f64 gold.
    np.testing.assert_allclose(np.asarray(out), ref, rtol=2e-2, atol=2e-2)

    print("KERNEL_OK")
</pallas_src>

<mosaic_0001>
module attributes {stable_mosaic.version = 11 : i64} {
  func.func @_sinc_fused_kernel(%arg0: i32, %arg1: memref<90x160xbf16, #tpu.memory_space<vmem>>, %arg2: memref<1x160xf32, #tpu.memory_space<vmem>>, %arg3: memref<160x128xbf16, #tpu.memory_space<vmem>>, %arg4: memref<1x128xf32, #tpu.memory_space<vmem>>, %arg5: memref<152x90xf32, #tpu.memory_space<vmem>>, %arg6: memref<152x128xf32, #tpu.memory_space<vmem>>) attributes {dimension_semantics = [#tpu.dimension_semantics<parallel>], iteration_bounds = array<i64: 2>, scalar_prefetch = 0 : i64, scratch_operands = 0 : i64, tpu.core_type = #tpu.core_type<tc>, window_params = [{pipeline_mode = #tpu.pipeline_mode<synchronous>, transform_indices = @transform_0, window_bounds = array<i64: 90, 160>}, {pipeline_mode = #tpu.pipeline_mode<synchronous>, transform_indices = @transform_1, window_bounds = array<i64: 1, 160>}, {pipeline_mode = #tpu.pipeline_mode<synchronous>, transform_indices = @transform_2, window_bounds = array<i64: 160, 128>}, {pipeline_mode = #tpu.pipeline_mode<synchronous>, transform_indices = @transform_3, window_bounds = array<i64: 1, 128>}, {transform_indices = @transform_4, window_bounds = array<i64: 152, 90>}, {transform_indices = @transform_5, window_bounds = array<i64: 152, 128>}]} {
    %c0 = arith.constant 0 : index
    %c0_0 = arith.constant 0 : index
    %0 = vector.load %arg5[%c0, %c0_0] : memref<152x90xf32, #tpu.memory_space<vmem>>, vector<152x90xf32>
    %1 = arith.truncf %0 : vector<152x90xf32> to vector<152x90xbf16>
    %c0_1 = arith.constant 0 : index
    %c0_2 = arith.constant 0 : index
    %2 = vector.load %arg1[%c0_1, %c0_2] : memref<90x160xbf16, #tpu.memory_space<vmem>>, vector<90x160xbf16>
    %cst = arith.constant dense<0.000000e+00> : vector<152x160xf32>
    %3 = tpu.matmul %1, %2, %cst {dimension_numbers = #tpu.dot_dimension_numbers<[1], [0], [0], [1], [0, 0, 1, 1], [], []>} : vector<152x90xbf16>, vector<90x160xbf16>, vector<152x160xf32> -> vector<152x160xf32>
    %c0_3 = arith.constant 0 : index
    %c0_4 = arith.constant 0 : index
    %4 = vector.load %arg2[%c0_3, %c0_4] : memref<1x160xf32, #tpu.memory_space<vmem>>, vector<1x160xf32>
    %5 = vector.broadcast %4 : vector<1x160xf32> to vector<152x160xf32>
    %6 = arith.addf %3, %5 : vector<152x160xf32>
    %cst_5 = arith.constant 0.000000e+00 : f32
    %7 = vector.broadcast %cst_5 : f32 to vector<152x160xf32>
    %8 = arith.maximumf %6, %7 : vector<152x160xf32>
    %9 = arith.truncf %8 : vector<152x160xf32> to vector<152x160xbf16>
    %c0_6 = arith.constant 0 : index
    %c0_7 = arith.constant 0 : index
    %10 = vector.load %arg3[%c0_6, %c0_7] : memref<160x128xbf16, #tpu.memory_space<vmem>>, vector<160x128xbf16>
    %cst_8 = arith.constant dense<0.000000e+00> : vector<152x128xf32>
    %11 = tpu.matmul %9, %10, %cst_8 {dimension_numbers = #tpu.dot_dimension_numbers<[1], [0], [0], [1], [0, 0, 1, 1], [], []>} : vector<152x160xbf16>, vector<160x128xbf16>, vector<152x128xf32> -> vector<152x128xf32>
    %c0_9 = arith.constant 0 : index
    %c0_10 = arith.constant 0 : index
    %12 = vector.load %arg4[%c0_9, %c0_10] : memref<1x128xf32, #tpu.memory_space<vmem>>, vector<1x128xf32>
    %13 = vector.broadcast %12 : vector<1x128xf32> to vector<152x128xf32>
    %14 = arith.addf %11, %13 : vector<152x128xf32>
    %c0_11 = arith.constant 0 : index
    %c0_12 = arith.constant 0 : index
    %15 = vector.load %arg6[%c0_11, %c0_12] : memref<152x128xf32, #tpu.memory_space<vmem>>, vector<152x128xf32>
    tpu.vector_store %arg6[%c0_11, %c0_12], %14 {strides = array<i32>} : memref<152x128xf32, #tpu.memory_space<vmem>>, vector<152x128xf32>,
    return
  }
  func.func @transform_0(%arg0: i32) -> (i32, i32) {
    %c0_i32 = arith.constant 0 : i32
    %c0_i32_0 = arith.constant 0 : i32
    %c0_i32_1 = arith.constant 0 : i32
    return %c0_i32, %c0_i32_0 : i32, i32
  }
  func.func @transform_1(%arg0: i32) -> (i32, i32) {
    %c0_i32 = arith.constant 0 : i32
    %c0_i32_0 = arith.constant 0 : i32
    %c0_i32_1 = arith.constant 0 : i32
    return %c0_i32, %c0_i32_0 : i32, i32
  }
  func.func @transform_2(%arg0: i32) -> (i32, i32) {
    %c0_i32 = arith.constant 0 : i32
    %c0_i32_0 = arith.constant 0 : i32
    %c0_i32_1 = arith.constant 0 : i32
    return %c0_i32, %c0_i32_0 : i32, i32
  }
  func.func @transform_3(%arg0: i32) -> (i32, i32) {
    %c0_i32 = arith.constant 0 : i32
    %c0_i32_0 = arith.constant 0 : i32
    %c0_i32_1 = arith.constant 0 : i32
    return %c0_i32, %c0_i32_0 : i32, i32
  }
  func.func @transform_4(%arg0: i32) -> (i32, i32) {
    %c0_i32 = arith.constant 0 : i32
    %c0_i32_0 = arith.constant 0 : i32
    return %arg0, %c0_i32 : i32, i32
  }
  func.func @transform_5(%arg0: i32) -> (i32, i32) {
    %c0_i32 = arith.constant 0 : i32
    %c0_i32_0 = arith.constant 0 : i32
    return %arg0, %c0_i32 : i32, i32
  }
}

</mosaic_0001>

<bundles_post_ra>
// kernel: tpu_custom_call.1
= control target key start
LH: loop header
LB: loop body
LE: loop exit
PB: predicated region body
PF: predicated region fallthrough
CT: control target
= control target key end

     0   :  { %10 = vsyncpa [#allocation3], 0  ;;  %s1492_s0 = inlined_call_operand.vmem [shape: bf16[90,160], index: 0, kind: input, shape index: {}]   ;;  %s1493_s1 = inlined_call_operand.vmem [shape: f32[1,160], index: 1, kind: input, shape index: {}]   ;;  %s1494_s2 = inlined_call_operand.vmem [shape: bf16[160,128], index: 2, kind: input, shape index: {}]   ;;  %s1495_s3 = inlined_call_operand.vmem [shape: f32[1,128], index: 3, kind: input, shape index: {}]   ;;  %s1496_s4 = inlined_call_operand.vmem [shape: f32[300,90], index: 4, kind: input, shape index: {}]   ;;  %s1497_s5 = inlined_call_operand.hbm [shape: f32[300,128], index: 5, kind: output, shape index: {}]  }
   0x1   :  { %12 = vsyncpa [#allocation3 + $0x1], 0  ;;  %s1160_s18 = smov 0   ;;  %s1162_s19 = smov 0  }
   0x2   :  { %s1164_s20 = smov 0   ;;  %s1166_s21 = smov 0  }
   0x3 LB: > { %s1181_s22 = sadd.s32 4294967295, %s1126_s21   ;;  %s872_s23 = sadd.s32 4294967294, %s1126_s21   ;;  %s1126_s21 = sphi %s1166_s21, %s1503_s21   ;;  %s1122_s20 = sphi %s1164_s20, %s1502_s20   ;;  %s1118_s19 = sphi %s1162_s19, %s1501_s19   ;;  %s1114_s18 = sphi %s1160_s18, %s1500_s18  }
   0x4   : > { %s1185_s24 = sadd.s32 1, %s1126_s21   ;;  %s135_s25 = sadd.s32 1, %s1122_s20 }
   0x5   : > { %s132_s26 = ssub.s32 %s1126_s21, %s1185_s24  ;;  %p145_p0 = scmp.ne.s32.totalorder %s1122_s20, %s1118_s19 }
   0x6   : > { %p133_p1 = scmp.eq.s32.totalorder %s132_s26, 0  ;;  %p146_p2 = scmp.eq.s32.totalorder %s1181_s22, 1 }
   0x7   : > { %p151_p3 = scmp.ne.s32.totalorder %s1118_s19, %s1114_s18  ;;  %p152_p4 = scmp.eq.s32.totalorder %s872_s23, 1 }
   0x8   : > { %s1196_s27 = scalar_select %p133_p1, %s1122_s20, %s135_s25  }
   0x9   : > { %p1198_p5 = por %p146_p2, %p145_p0  ;;  %p1202_p6 = por %p152_p4, %p151_p3 }
   0xa   : > { %p875_p7 = scmp.ge.s32.totalorder %s1126_s21, 1  ;;  %p191_p8 = scmp.lt.s32.totalorder %s1126_s21, 3 }
   0xc   : > { %p192_p9 = pnand %p875_p7, %p191_p8 }
   0xd   : > { %s219_s9 = smul.u32 (!%p192_p9), 19, %s1181_s22  ;;  %s1084_s23 = scalar_lea.hbm (!%p192_p9), %s1497_s5, 304 }
   0xe   : > { %195 = sbr.rel (%p192_p9) target bundleno = 471 (0x1d7), region = 40 }
   0xf   : > { %p220_p10 = scmp.lt.s32.totalorder (!%p192_p9), %s219_s9, 37  ;;  %s1020_s8 = smul.u32 (!%p192_p9), 152, %s1181_s22 }
  0x11   : > { %s806_s11 = scalar_lea.hbm (!%p192_p9), %s1497_s5, %s1020_s8 }
  0x12   : > { %s809_s13 = sshll.u32 (!%p192_p9), %s806_s11, 4  ;;  %s810_s13 = int_to_ptr.hbm [resolvable:$true] %s809_s13 }
  0x13   : > { %v919_v0 = vld [vmem:[%s1492_s0 + $0x50] sm:$0xf]  ;;  %v1009_v1 = vld [vmem:[%s1492_s0 + $0x54] sm:$0x10]  ;;  %vm363_vm0 = vcmask 1044480   ;;  %s1505_s9 = smov (!%p220_p10, %s219_s9), 37 }
  0x14   : > { %v920_v2 = vor.u32 %v1009_v1, %v919_v0  ;;  %v1008_v3 = vld [vmem:[%s1492_s0 + $0x54] sm:$0xf]  ;;  %v921_v4 = vld [vmem:[%s1492_s0 + $0x58] sm:$0x10]  ;;  %v911_v5 = vld [vmem:[%s1492_s0 + $0x40] sm:$0xf] }
  0x15   : > { %v924_v6 = vor.u32 %v1008_v3, %v921_v4  ;;  %v1007_v7 = vld [vmem:[%s1492_s0 + $0x44] sm:$0xf0]  ;;  %v1006_v8 = vld [vmem:[%s1492_s0 + $0x44] sm:$0xf]  ;;  %v913_v9 = vld [vmem:[%s1492_s0 + $0x48] sm:$0xf0] }
  0x16   : > { %v365_v10 = vsel %vm363_vm0, %v920_v2, 0  ;;  %v912_v12 = vor.u32 %v1007_v7, %v911_v5  ;;  %v916_v13 = vor.u32 %v1006_v8, %v913_v9  ;;  %v903_v14 = vld [vmem:[%s1492_s0 + $0x30] sm:$0xf]  ;;  %v1005_v15 = vld [vmem:[%s1492_s0 + $0x34] sm:$0xf0]  ;;  %s876_s16 = sshll.u32 %s1505_s9, 3 }
  0x17   : > { %372 = vmatpush.bf16.msra.mxu0 %v365_v10  ;;  %v368_v11 = vsel %vm363_vm0, %v924_v6, 0  ;;  %v1004_v16 = vld [vmem:[%s1492_s0 + $0x34] sm:$0xf]  ;;  %v905_v17 = vld [vmem:[%s1492_s0 + $0x38] sm:$0xf0]  ;;  %v904_v18 = vor.u32 %v1005_v15, %v903_v14  ;;  %s1278_s7 = scalar_lea.vmem %s1496_s4, %s876_s16  ;;  %vm332_vm1 = vcmask 736256  }
  0x18   : > { %430 = vmatpush.bf16.msra.mxu1 %v368_v11  ;;  %v908_v19 = vor.u32 %v1004_v16, %v905_v17  ;;  %v895_v20 = vld [vmem:[%s1492_s0 + $0x20] sm:$0xf]  ;;  %v1003_v21 = vld [vmem:[%s1492_s0 + $0x24] sm:$0xf0]  ;;  %v1002_v22 = vld [vmem:[%s1492_s0 + $0x24] sm:$0xf] }
  0x19   : > { %v897_v23 = vld [vmem:[%s1492_s0 + $0x28] sm:$0xf0]  ;;  %v896_v24 = vor.u32 %v1003_v21, %v895_v20  ;;  %v887_v26 = vld [vmem:[%s1492_s0 + $0x10] sm:$0xf]  ;;  %v1001_v27 = vld [vmem:[%s1492_s0 + $0x14] sm:$0xf0] }
  0x1a   : > { %v900_v25 = vor.u32 %v1002_v22, %v897_v23  ;;  %v1000_v28 = vld [vmem:[%s1492_s0 + $0x14] sm:$0xf]  ;;  %v889_v29 = vld [vmem:[%s1492_s0 + $0x18] sm:$0xf0]  ;;  %v888_v30 = vor.u32 %v1001_v27, %v887_v26  ;;  %v879_v32 = vld [vmem:[%s1492_s0] sm:$0xf] }
  0x1b   : > { %373 = vmatpush.bf16.msra.mxu0 %v912_v12  ;;  %v892_v31 = vor.u32 %v1000_v28, %v889_v29  ;;  %v999_v33 = vld [vmem:[%s1492_s0 + $0x4] sm:$0xf0]  ;;  %v998_v34 = vld [vmem:[%s1492_s0 + $0x4] sm:$0xf]  ;;  %v881_v35 = vld [vmem:[%s1492_s0 + $0x8] sm:$0xf0] }
  0x1c   : > { %431 = vmatpush.bf16.msra.mxu1 %v916_v13  ;;  %v880_v36 = vor.u32 %v999_v33, %v879_v32  ;;  %v227_v37 = vld [vmem:[%s1278_s7] sm:$0xff]  ;;  %v228_v38 = vld [vmem:[%s1278_s7 + $0x8] sm:$0xff]  ;;  %v884_v39 = vor.u32 %v998_v34, %v881_v35  ;;  %v229_v41 = vld [vmem:[%s1278_s7 + $0x10] sm:$0xff]  ;;  %vm628_vm2 = vcmask 261120   ;;  %s1078_s14 = sshra.s32 %s810_s13, 4  ;;  %s1079_s14 = int_to_ptr.hbm [resolvable:$true] %s1078_s14 }
  0x1d   : > { %v246_v40 = vpack.c.bf16 %v228_v38, %v227_v37  ;;  %v230_v42 = vld [vmem:[%s1278_s7 + $0x18] sm:$0xff]  ;;  %v231_v44 = vld [vmem:[%s1278_s7 + $0x20] sm:$0xff]  ;;  %v232_v45 = vld [vmem:[%s1278_s7 + $0x28] sm:$0xff]  ;;  %s1080_s15 = scalar_lea.hbm %s1079_s14, 152  ;;  %p1085_p0 = scmp.lt.s32.totalorder %s1079_s14, %s1497_s5 }
  0x1e   : > { %v247_v43 = vpack.c.bf16 %v230_v42, %v229_v41  ;;  %v248_v46 = vpack.c.bf16 %v232_v45, %v231_v44  ;;  %v233_v47 = vld [vmem:[%s1278_s7 + $0x30] sm:$0xff]  ;;  %v234_v48 = vld [vmem:[%s1278_s7 + $0x38] sm:$0xff]  ;;  %v235_v50 = vld [vmem:[%s1278_s7 + $0x40] sm:$0xff]  ;;  %p1081_p11 = scmp.ne.s32.totalorder %s1079_s14, %s1080_s15  ;;  %p1086_p1 = scmp.lt.s32.totalorder %s1084_s23, %s1080_s15 }
  0x1f   : > { %374 = vmatpush.bf16.msra.mxu0 %v904_v18  ;;  %v249_v49 = vpack.c.bf16 %v234_v48, %v233_v47  ;;  %v236_v51 = vld [vmem:[%s1278_s7 + $0x48] sm:$0xff]  ;;  %v1017_v53 = vld [vmem:[%s1494_s2 + $0x38] sm:$0xff]  ;;  %v237_v54 = vld [vmem:[%s1278_s7 + $0x50] sm:$0xff] }
  0x20   : > { %432 = vmatpush.bf16.msra.mxu1 %v908_v19  ;;  %v250_v52 = vpack.c.bf16 %v236_v51, %v235_v50  ;;  %659 = vmatpush.bf16.msra.mxu2 %v1017_v53  ;;  %v238_v55 = vld [vmem:[%s1278_s7 + $0x58] sm:$0xff]  ;;  %v1016_v57 = vld [vmem:[%s1494_s2 + $0x30] sm:$0xff]  ;;  %v1015_v58 = vld [vmem:[%s1494_s2 + $0x28] sm:$0xff]  ;;  %p1082_p12 = pnand %p1081_p11, %p1198_p5  ;;  %p1087_p2 = por %p1086_p1, %p1085_p0 }
  0x21   : > { %v251_v56 = vpack.c.bf16 %v238_v55, %v237_v54  ;;  %v1014_v59 = vld [vmem:[%s1494_s2 + $0x20] sm:$0xff]  ;;  %v240_v61 = vld [vmem:[%s1278_s7 + $0x68] sm:$0xff]  ;;  %v1013_v63 = vld [vmem:[%s1494_s2 + $0x18] sm:$0xff] }
  0x22   : > { %v239_v60 = vld [vmem:[%s1278_s7 + $0x60] sm:$0xff]  ;;  %v1012_v0 = vld [vmem:[%s1494_s2 + $0x10] sm:$0xff]  ;;  %v1011_v1 = vld [vmem:[%s1494_s2 + $0x8] sm:$0xff]  ;;  %p1083_p13 = pneg %p1082_p12 }
  0x23   : > { %375 = vmatpush.bf16.msra.mxu0 %v896_v24  ;;  %v252_v62 = vpack.c.bf16 %v240_v61, %v239_v60  ;;  %v1019_v2 = vld [vmem:[%s1494_s2 + $0x48] sm:$0xff]  ;;  %v1010_v3 = vld [vmem:[%s1494_s2] sm:$0xff]  ;;  %v241_v5 = vld [vmem:[%s1278_s7 + $0x70] sm:$0xff] }
  0x24   : > { %433 = vmatpush.bf16.msra.mxu1 %v900_v25  ;;  %660 = vmatpush.bf16.msra.mxu2 %v1016_v57  ;;  %v1018_v4 = vld [vmem:[%s1494_s2 + $0x40] sm:$0xff]  ;;  %v242_v6 = vld [vmem:[%s1278_s7 + $0x78] sm:$0xff]  ;;  %v244_v9 = vld [vmem:[%s1278_s7 + $0x88] sm:$0xff]  ;;  %p1088_p3 = pnand %p1087_p2, %p1083_p13 }
  0x25   : > { %723 = vmatpush.bf16.msra.mxu3 %v1019_v2  ;;  %v253_v7 = vpack.c.bf16 %v242_v6, %v241_v5  ;;  %v243_v8 = vld [vmem:[%s1278_s7 + $0x80] sm:$0xff]  ;;  %v245_v26 = vld [vmem:[%s1278_s7 + $0x90] sm:$0xff]  ;;  %s216_s7 = sand.u32 1, %s1118_s19  }
  0x26   : > { %v254_v10 = vpack.c.bf16 %v244_v9, %v243_v8  ;;  %v268_v11 = vld [vmem:[%s1493_s1] sm:$0x3]  ;;  %v255_v29 = vpack.c.bf16 %v245_v26, %v245_v26  ;;  %s1021_s30 = smul.u32 152, %s216_s7  ;;  %s795_s22 = scalar_lea.sflag [#allocation3], %s216_s7 }
  0x27   : > { %376 = vmatpush.bf16.msra.mxu0 %v888_v30  ;;  %v1353_v14 = vperm.slane %v268_v11, 0  ;;  %v1356_v15 = vperm.slane %v268_v11, 1 }
  0x28   : > { %434 = vmatpush.bf16.msra.mxu1 %v892_v31  ;;  %661 = vmatpush.bf16.msra.mxu2 %v1015_v58  ;;  %s1418_s6 = scalar_lea.vmem [#allocation2], %s1021_s30 }
  0x29   : > { %724 = vmatpush.bf16.msra.mxu3 %v1018_v4  ;;  %s807_s12 = sshll.u32 %s1418_s6, 4  ;;  %s808_s12 = int_to_ptr.vmem [resolvable:$true] %s807_s12 }
  0x2b   : > { %377 = vmatpush.bf16.msra.mxu0 %v880_v36 }
  0x2c   : > { %435 = vmatpush.bf16.msra.mxu1 %v884_v39  ;;  %662 = vmatpush.bf16.msra.mxu2 %v1014_v59 }
  0x2e   : > { %925 = vmatmul.msk.bf16.vlgmr.msra.gmra.mxu0 %vm332_vm1, %v246_v40 }
  0x2f   : > { %935 = vmatmul.msk.bf16.vlgmr.msra.gmra.mxu1 %vm332_vm1, %v246_v40 }
  0x30   : > { %663 = vmatpush.bf16.msra.mxu2 %v1013_v63 }
  0x34   : > { %664 = vmatpush.bf16.msra.mxu2 %v1012_v0 }
  0x38   : > { %665 = vmatpush.bf16.msra.mxu2 %v1011_v1 }
  0x3c   : > { %666 = vmatpush.bf16.msra.mxu2 %v1010_v3 }
  0x3e   : > { %926 = vmatmul.msk.bf16.gmra.mxu0 %vm332_vm1, %v247_v43 }
  0x3f   : > { %936 = vmatmul.msk.bf16.gmra.mxu1 %vm332_vm1, %v247_v43 }
  0x4e   : > { %927 = vmatmul.msk.bf16.gmra.mxu0 %vm332_vm1, %v248_v46 }
  0x4f   : > { %937 = vmatmul.msk.bf16.gmra.mxu1 %vm332_vm1, %v248_v46 }
  0x5e   : > { %928 = vmatmul.msk.bf16.gmra.mxu0 %vm332_vm1, %v249_v49 }
  0x5f   : > { %938 = vmatmul.msk.bf16.gmra.mxu1 %vm332_vm1, %v249_v49 }
  0x6e   : > { %929 = vmatmul.msk.bf16.gmra.mxu0 %vm332_vm1, %v250_v52 }
  0x6f   : > { %939 = vmatmul.msk.bf16.gmra.mxu1 %vm332_vm1, %v250_v52 }
  0x7e   : > { %930 = vmatmul.msk.bf16.gmra.mxu0 %vm332_vm1, %v251_v56 }
  0x7f   : > { %940 = vmatmul.msk.bf16.gmra.mxu1 %vm332_vm1, %v251_v56 }
  0x8e   : > { %931 = vmatmul.msk.bf16.gmra.mxu0 %vm332_vm1, %v252_v62 }
  0x8f   : > { %941 = vmatmul.msk.bf16.gmra.mxu1 %vm332_vm1, %v252_v62 }
  0x9e   : > { %932 = vmatmul.msk.bf16.gmra.mxu0 %vm332_vm1, %v253_v7 }
  0x9f   : > { %942 = vmatmul.msk.bf16.gmra.mxu1 %vm332_vm1, %v253_v7 }
  0xab   : > { %v379_v12 = vpop.f32.mrf.mxu0 }
  0xac   : > { %v437_v13 = vpop.f32.mrf.mxu1  ;;  %v380_v16 = vadd.f32 %v379_v12, %v1353_v14 }
  0xad   : > { %v438_v17 = vadd.f32 %v437_v13, %v1356_v15 }
  0xae   : > { %933 = vmatmul.msk.bf16.gmra.mxu0 %vm332_vm1, %v254_v10  ;;  %v486_v22 = vmax.f32 %v380_v16, 0.0 }
  0xaf   : > { %943 = vmatmul.msk.bf16.gmra.mxu1 %vm332_vm1, %v254_v10  ;;  %v487_v24 = vmax.f32 %v438_v17, 0.0 }
  0xb3   : > { %v381_v18 = vpop.f32.mrf.mxu0 }
  0xb4   : > { %v382_v19 = vadd.f32 %v381_v18, %v1353_v14  ;;  %v439_v20 = vpop.f32.mrf.mxu1 }
  0xb5   : > { %v440_v21 = vadd.f32 %v439_v20, %v1356_v15 }
  0xb6   : > { %v488_v23 = vmax.f32 %v382_v19, 0.0 }
  0xb7   : > { %v489_v25 = vmax.f32 %v440_v21, 0.0 }
  0xb8   : > { %v524_v27 = vpack.c.bf16 %v488_v23, %v486_v22 }
  0xb9   : > { %v525_v28 = vpack.c.bf16 %v489_v25, %v487_v24 }
  0xba   : > { %667 = vmatmul.bf16.vlgmr.msra.gmra.mxu2 %v524_v27 }
  0xbb   : > { %985 = vmatmul.msk.bf16.vlgmr.msra.gmra.mxu3 %vm628_vm2, %v525_v28  ;;  %v384_v30 = vpop.f32.mrf.mxu0 }
  0xbc   : > { %v442_v31 = vpop.f32.mrf.mxu1  ;;  %v385_v32 = vadd.f32 %v384_v30, %v1353_v14 }
  0xbd   : > { %v443_v33 = vadd.f32 %v442_v31, %v1356_v15 }
  0xbe   : > { %934 = vmatmul.msk.bf16.gmra.mxu0 %vm332_vm1, %v255_v29  ;;  %v490_v38 = vmax.f32 %v385_v32, 0.0 }
  0xbf   : > { %944 = vmatmul.msk.bf16.gmra.mxu1 %vm332_vm1, %v255_v29  ;;  %v491_v40 = vmax.f32 %v443_v33, 0.0 }
  0xc3   : > { %v386_v34 = vpop.f32.mrf.mxu0 }
  0xc4   : > { %v387_v35 = vadd.f32 %v386_v34, %v1353_v14  ;;  %v444_v36 = vpop.f32.mrf.mxu1 }
  0xc5   : > { %v445_v37 = vadd.f32 %v444_v36, %v1356_v15 }
  0xc6   : > { %v492_v39 = vmax.f32 %v387_v35, 0.0 }
  0xc7   : > { %v493_v41 = vmax.f32 %v445_v37, 0.0 }
  0xc8   : > { %v526_v42 = vpack.c.bf16 %v492_v39, %v490_v38 }
  0xc9   : > { %v527_v43 = vpack.c.bf16 %v493_v41, %v491_v40 }
  0xca   : > { %672 = vmatmul.bf16.gmra.mxu2 %v526_v42 }
  0xcb   : > { %986 = vmatmul.msk.bf16.gmra.mxu3 %vm628_vm2, %v527_v43  ;;  %v389_v44 = vpop.f32.mrf.mxu0 }
  0xcc   : > { %v447_v45 = vpop.f32.mrf.mxu1  ;;  %v390_v46 = vadd.f32 %v389_v44, %v1353_v14 }
  0xcd   : > { %v448_v47 = vadd.f32 %v447_v45, %v1356_v15 }
  0xce   : > { %v494_v52 = vmax.f32 %v390_v46, 0.0 }
  0xcf   : > { %v495_v54 = vmax.f32 %v448_v47, 0.0 }
  0xd3   : > { %v391_v48 = vpop.f32.mrf.mxu0 }
  0xd4   : > { %v392_v49 = vadd.f32 %v391_v48, %v1353_v14  ;;  %v449_v50 = vpop.f32.mrf.mxu1 }
  0xd5   : > { %v450_v51 = vadd.f32 %v449_v50, %v1356_v15 }
  0xd6   : > { %v496_v53 = vmax.f32 %v392_v49, 0.0 }
  0xd7   : > { %v497_v55 = vmax.f32 %v450_v51, 0.0 }
  0xd8   : > { %v528_v56 = vpack.c.bf16 %v496_v53, %v494_v52 }
  0xd9   : > { %v529_v57 = vpack.c.bf16 %v497_v55, %v495_v54 }
  0xda   : > { %677 = vmatmul.bf16.gmra.mxu2 %v528_v56 }
  0xdb   : > { %987 = vmatmul.msk.bf16.gmra.mxu3 %vm628_vm2, %v529_v57  ;;  %v394_v58 = vpop.f32.mrf.mxu0 }
  0xdc   : > { %v452_v59 = vpop.f32.mrf.mxu1  ;;  %v395_v60 = vadd.f32 %v394_v58, %v1353_v14 }
  0xdd   : > { %v453_v61 = vadd.f32 %v452_v59, %v1356_v15 }
  0xde   : > { %v498_v2 = vmax.f32 %v395_v60, 0.0 }
  0xdf   : > { %v499_v4 = vmax.f32 %v453_v61, 0.0 }
  0xe3   : > { %v396_v62 = vpop.f32.mrf.mxu0 }
  0xe4   : > { %v397_v63 = vadd.f32 %v396_v62, %v1353_v14  ;;  %v454_v0 = vpop.f32.mrf.mxu1 }
  0xe5   : > { %v455_v1 = vadd.f32 %v454_v0, %v1356_v15 }
  0xe6   : > { %v500_v3 = vmax.f32 %v397_v63, 0.0 }
  0xe7   : > { %v501_v5 = vmax.f32 %v455_v1, 0.0 }
  0xe8   : > { %v530_v6 = vpack.c.bf16 %v500_v3, %v498_v2 }
  0xe9   : > { %v531_v7 = vpack.c.bf16 %v501_v5, %v499_v4 }
  0xea   : > { %682 = vmatmul.bf16.gmra.mxu2 %v530_v6 }
  0xeb   : > { %988 = vmatmul.msk.bf16.gmra.mxu3 %vm628_vm2, %v531_v7  ;;  %v399_v8 = vpop.f32.mrf.mxu0 }
  0xec   : > { %v457_v9 = vpop.f32.mrf.mxu1  ;;  %v400_v10 = vadd.f32 %v399_v8, %v1353_v14 }
  0xed   : > { %v458_v11 = vadd.f32 %v457_v9, %v1356_v15 }
  0xee   : > { %v502_v18 = vmax.f32 %v400_v10, 0.0 }
  0xef   : > { %v503_v20 = vmax.f32 %v458_v11, 0.0 }
  0xf3   : > { %v401_v12 = vpop.f32.mrf.mxu0 }
  0xf4   : > { %v402_v13 = vadd.f32 %v401_v12, %v1353_v14  ;;  %v459_v16 = vpop.f32.mrf.mxu1 }
  0xf5   : > { %v460_v17 = vadd.f32 %v459_v16, %v1356_v15 }
  0xf6   : > { %v504_v19 = vmax.f32 %v402_v13, 0.0 }
  0xf7   : > { %v505_v21 = vmax.f32 %v460_v17, 0.0 }
  0xf8   : > { %v532_v22 = vpack.c.bf16 %v504_v19, %v502_v18  ;;  %v1410_v18 = vld [vmem:[%s1495_s3] ss:$0 sm:$0xff] }
  0xf9   : > { %v533_v23 = vpack.c.bf16 %v505_v21, %v503_v20 }
  0xfa   : > { %687 = vmatmul.bf16.gmra.mxu2 %v532_v22 }
  0xfb   : > { %989 = vmatmul.msk.bf16.gmra.mxu3 %vm628_vm2, %v533_v23  ;;  %v404_v24 = vpop.f32.mrf.mxu0 }
  0xfc   : > { %v462_v25 = vpop.f32.mrf.mxu1  ;;  %v405_v26 = vadd.f32 %v404_v24, %v1353_v14 }
  0xfd   : > { %v463_v27 = vadd.f32 %v462_v25, %v1356_v15 }
  0xfe   : > { %v506_v32 = vmax.f32 %v405_v26, 0.0 }
  0xff   : > { %v507_v34 = vmax.f32 %v463_v27, 0.0 }
 0x103   : > { %v406_v28 = vpop.f32.mrf.mxu0 }
 0x104   : > { %v407_v29 = vadd.f32 %v406_v28, %v1353_v14  ;;  %v464_v30 = vpop.f32.mrf.mxu1 }
 0x105   : > { %v465_v31 = vadd.f32 %v464_v30, %v1356_v15 }
 0x106   : > { %v508_v33 = vmax.f32 %v407_v29, 0.0 }
 0x107   : > { %v509_v35 = vmax.f32 %v465_v31, 0.0 }
 0x108   : > { %v534_v36 = vpack.c.bf16 %v508_v33, %v506_v32 }
 0x109   : > { %v535_v37 = vpack.c.bf16 %v509_v35, %v507_v34 }
 0x10a   : > { %692 = vmatmul.bf16.gmra.mxu2 %v534_v36 }
 0x10b   : > { %990 = vmatmul.msk.bf16.gmra.mxu3 %vm628_vm2, %v535_v37  ;;  %v409_v38 = vpop.f32.mrf.mxu0 }
 0x10c   : > { %v467_v39 = vpop.f32.mrf.mxu1  ;;  %v410_v40 = vadd.f32 %v409_v38, %v1353_v14 }
 0x10d   : > { %v468_v41 = vadd.f32 %v467_v39, %v1356_v15 }
 0x10e   : > { %v510_v46 = vmax.f32 %v410_v40, 0.0 }
 0x10f   : > { %v511_v48 = vmax.f32 %v468_v41, 0.0 }
 0x113   : > { %v411_v42 = vpop.f32.mrf.mxu0 }
 0x114   : > { %v412_v43 = vadd.f32 %v411_v42, %v1353_v14  ;;  %v469_v44 = vpop.f32.mrf.mxu1 }
 0x115   : > { %v470_v45 = vadd.f32 %v469_v44, %v1356_v15 }
 0x116   : > { %v512_v47 = vmax.f32 %v412_v43, 0.0 }
 0x117   : > { %v513_v49 = vmax.f32 %v470_v45, 0.0 }
 0x118   : > { %v536_v50 = vpack.c.bf16 %v512_v47, %v510_v46 }
 0x119   : > { %v537_v51 = vpack.c.bf16 %v513_v49, %v511_v48 }
 0x11a   : > { %697 = vmatmul.bf16.gmra.mxu2 %v536_v50 }
 0x11b   : > { %991 = vmatmul.msk.bf16.gmra.mxu3 %vm628_vm2, %v537_v51  ;;  %v414_v52 = vpop.f32.mrf.mxu0 }
 0x11c   : > { %v472_v53 = vpop.f32.mrf.mxu1  ;;  %v415_v54 = vadd.f32 %v414_v52, %v1353_v14 }
 0x11d   : > { %v473_v55 = vadd.f32 %v472_v53, %v1356_v15 }
 0x11e   : > { %v514_v60 = vmax.f32 %v415_v54, 0.0 }
 0x11f   : > { %v515_v62 = vmax.f32 %v473_v55, 0.0 }
 0x123   : > { %v416_v56 = vpop.f32.mrf.mxu0 }
 0x124   : > { %v417_v57 = vadd.f32 %v416_v56, %v1353_v14  ;;  %v474_v58 = vpop.f32.mrf.mxu1 }
 0x125   : > { %v475_v59 = vadd.f32 %v474_v58, %v1356_v15 }
 0x126   : > { %v516_v61 = vmax.f32 %v417_v57, 0.0 }
 0x127   : > { %v517_v63 = vmax.f32 %v475_v59, 0.0 }
 0x128   : > { %v538_v0 = vpack.c.bf16 %v516_v61, %v514_v60 }
 0x129   : > { %v539_v1 = vpack.c.bf16 %v517_v63, %v515_v62 }
 0x12a   : > { %702 = vmatmul.bf16.gmra.mxu2 %v538_v0 }
 0x12b   : > { %992 = vmatmul.msk.bf16.gmra.mxu3 %vm628_vm2, %v539_v1  ;;  %v419_v2 = vpop.f32.mrf.mxu0 }
 0x12c   : > { %v477_v3 = vpop.f32.mrf.mxu1  ;;  %v420_v4 = vadd.f32 %v419_v2, %v1353_v14 }
 0x12d   : > { %v478_v5 = vadd.f32 %v477_v3, %v1356_v15 }
 0x12e   : > { %v518_v10 = vmax.f32 %v420_v4, 0.0 }
 0x12f   : > { %v519_v12 = vmax.f32 %v478_v5, 0.0 }
 0x133   : > { %v421_v6 = vpop.f32.mrf.mxu0 }
 0x134   : > { %v422_v7 = vadd.f32 %v421_v6, %v1353_v14  ;;  %v479_v8 = vpop.f32.mrf.mxu1 }
 0x135   : > { %v480_v9 = vadd.f32 %v479_v8, %v1356_v15 }
 0x136   : > { %v520_v11 = vmax.f32 %v422_v7, 0.0 }
 0x137   : > { %v521_v13 = vmax.f32 %v480_v9, 0.0 }
 0x138   : > { %v540_v16 = vpack.c.bf16 %v520_v11, %v518_v10 }
 0x139   : > { %v541_v17 = vpack.c.bf16 %v521_v13, %v519_v12 }
 0x13a   : > { %707 = vmatmul.bf16.gmra.mxu2 %v540_v16 }
 0x13b   : > { %993 = vmatmul.msk.bf16.gmra.mxu3 %vm628_vm2, %v541_v17  ;;  %v424_v19 = vpop.f32.mrf.mxu0 }
 0x13c   : > { %v482_v20 = vpop.f32.mrf.mxu1  ;;  %v425_v22 = vadd.f32 %v424_v19, %v1353_v14 }
 0x13d   : > { %v668_v21 = vpop.f32.mrf.mxu2  ;;  %v483_v25 = vadd.f32 %v482_v20, %v1356_v15 }
 0x13e   : > { %v669_v23 = vadd.f32 %v1410_v18, %v668_v21  ;;  %v726_v24 = vpop.f32.mrf.mxu3  ;;  %v522_v27 = vmax.f32 %v425_v22, 0.0 }
 0x13f   : > { %v523_v28 = vmax.f32 %v483_v25, 0.0 }
 0x140   : > { %v727_v26 = vadd.f32 %v726_v24, %v669_v23  ;;  %v542_v33 = vpack.c.bf16 %v522_v27, %v522_v27 }
 0x141   : > { %v543_v34 = vpack.c.bf16 %v523_v28, %v523_v28 }
 0x142   : > { %775 = vst [vmem:[%s1418_s6] sm:$0xff] %v727_v26 }
 0x143   : > { %v426_v29 = vpop.f32.mrf.mxu0 }
 0x144   : > { %v484_v30 = vpop.f32.mrf.mxu1 }
 0x145   : > { %v670_v31 = vpop.f32.mrf.mxu2 }
 0x146   : > { %v671_v32 = vadd.f32 %v1410_v18, %v670_v31  ;;  %v728_v14 = vpop.f32.mrf.mxu3 }
 0x148   : > { %v729_v35 = vadd.f32 %v728_v14, %v671_v32 }
 0x14a   : > { %776 = vst [vmem:[%s1418_s6 + $0x8] sm:$0xff] %v729_v35  ;;  %712 = vmatmul.bf16.gmra.mxu2 %v542_v33 }
 0x14b   : > { %994 = vmatmul.msk.bf16.gmra.mxu3 %vm628_vm2, %v543_v34 }
 0x14d   : > { %v673_v15 = vpop.f32.mrf.mxu2 }
 0x14e   : > { %v674_v36 = vadd.f32 %v1410_v18, %v673_v15  ;;  %v731_v37 = vpop.f32.mrf.mxu3 }
 0x150   : > { %v732_v38 = vadd.f32 %v731_v37, %v674_v36 }
 0x152   : > { %777 = vst [vmem:[%s1418_s6 + $0x10] sm:$0xff] %v732_v38 }
 0x155   : > { %v675_v39 = vpop.f32.mrf.mxu2 }
 0x156   : > { %v676_v40 = vadd.f32 %v1410_v18, %v675_v39  ;;  %v733_v41 = vpop.f32.mrf.mxu3 }
 0x158   : > { %v734_v42 = vadd.f32 %v733_v41, %v676_v40 }
 0x15a   : > { %778 = vst [vmem:[%s1418_s6 + $0x18] sm:$0xff] %v734_v42 }
 0x15d   : > { %v678_v43 = vpop.f32.mrf.mxu2 }
 0x15e   : > { %v679_v44 = vadd.f32 %v1410_v18, %v678_v43  ;;  %v736_v45 = vpop.f32.mrf.mxu3 }
 0x160   : > { %v737_v46 = vadd.f32 %v736_v45, %v679_v44 }
 0x162   : > { %779 = vst [vmem:[%s1418_s6 + $0x20] sm:$0xff] %v737_v46 }
 0x165   : > { %v680_v47 = vpop.f32.mrf.mxu2 }
 0x166   : > { %v681_v48 = vadd.f32 %v1410_v18, %v680_v47  ;;  %v738_v49 = vpop.f32.mrf.mxu3 }
 0x168   : > { %v739_v50 = vadd.f32 %v738_v49, %v681_v48 }
 0x16a   : > { %780 = vst [vmem:[%s1418_s6 + $0x28] sm:$0xff] %v739_v50 }
 0x16d   : > { %v683_v51 = vpop.f32.mrf.mxu2 }
 0x16e   : > { %v684_v52 = vadd.f32 %v1410_v18, %v683_v51  ;;  %v741_v53 = vpop.f32.mrf.mxu3 }
 0x170   : > { %v742_v54 = vadd.f32 %v741_v53, %v684_v52 }
 0x172   : > { %781 = vst [vmem:[%s1418_s6 + $0x30] sm:$0xff] %v742_v54 }
 0x175   : > { %v685_v55 = vpop.f32.mrf.mxu2 }
 0x176   : > { %v686_v56 = vadd.f32 %v1410_v18, %v685_v55  ;;  %v743_v57 = vpop.f32.mrf.mxu3 }
 0x178   : > { %v744_v58 = vadd.f32 %v743_v57, %v686_v56 }
 0x17a   : > { %782 = vst [vmem:[%s1418_s6 + $0x38] sm:$0xff] %v744_v58 }
 0x17d   : > { %v688_v59 = vpop.f32.mrf.mxu2 }
 0x17e   : > { %v689_v60 = vadd.f32 %v1410_v18, %v688_v59  ;;  %v746_v61 = vpop.f32.mrf.mxu3 }
 0x180   : > { %v747_v62 = vadd.f32 %v746_v61, %v689_v60 }
 0x182   : > { %783 = vst [vmem:[%s1418_s6 + $0x40] sm:$0xff] %v747_v62 }
 0x185   : > { %v690_v63 = vpop.f32.mrf.mxu2 }
 0x186   : > { %v691_v0 = vadd.f32 %v1410_v18, %v690_v63  ;;  %v748_v1 = vpop.f32.mrf.mxu3 }
 0x188   : > { %v749_v2 = vadd.f32 %v748_v1, %v691_v0 }
 0x18a   : > { %784 = vst [vmem:[%s1418_s6 + $0x48] sm:$0xff] %v749_v2 }
 0x18d   : > { %v693_v3 = vpop.f32.mrf.mxu2 }
 0x18e   : > { %v694_v4 = vadd.f32 %v1410_v18, %v693_v3  ;;  %v751_v5 = vpop.f32.mrf.mxu3 }
 0x190   : > { %v752_v6 = vadd.f32 %v751_v5, %v694_v4 }
 0x192   : > { %785 = vst [vmem:[%s1418_s6 + $0x50] sm:$0xff] %v752_v6 }
 0x195   : > { %v695_v7 = vpop.f32.mrf.mxu2 }
 0x196   : > { %v696_v8 = vadd.f32 %v1410_v18, %v695_v7  ;;  %v753_v9 = vpop.f32.mrf.mxu3 }
 0x198   : > { %v754_v10 = vadd.f32 %v753_v9, %v696_v8 }
 0x19a   : > { %786 = vst [vmem:[%s1418_s6 + $0x58] sm:$0xff] %v754_v10 }
 0x19d   : > { %v698_v11 = vpop.f32.mrf.mxu2 }
 0x19e   : > { %v699_v12 = vadd.f32 %v1410_v18, %v698_v11  ;;  %v756_v13 = vpop.f32.mrf.mxu3 }
 0x1a0   : > { %v757_v16 = vadd.f32 %v756_v13, %v699_v12 }
 0x1a2   : > { %787 = vst [vmem:[%s1418_s6 + $0x60] sm:$0xff] %v757_v16 }
 0x1a5   : > { %v700_v17 = vpop.f32.mrf.mxu2 }
 0x1a6   : > { %v701_v19 = vadd.f32 %v1410_v18, %v700_v17  ;;  %v758_v20 = vpop.f32.mrf.mxu3 }
 0x1a8   : > { %v759_v21 = vadd.f32 %v758_v20, %v701_v19 }
 0x1aa   : > { %788 = vst [vmem:[%s1418_s6 + $0x68] sm:$0xff] %v759_v21 }
 0x1ad   : > { %v703_v22 = vpop.f32.mrf.mxu2 }
 0x1ae   : > { %v704_v23 = vadd.f32 %v1410_v18, %v703_v22  ;;  %v761_v24 = vpop.f32.mrf.mxu3 }
 0x1b0   : > { %v762_v25 = vadd.f32 %v761_v24, %v704_v23 }
 0x1b2   : > { %789 = vst [vmem:[%s1418_s6 + $0x70] sm:$0xff] %v762_v25 }
 0x1b5   : > { %v705_v26 = vpop.f32.mrf.mxu2 }
 0x1b6   : > { %v706_v27 = vadd.f32 %v1410_v18, %v705_v26  ;;  %v763_v28 = vpop.f32.mrf.mxu3 }
 0x1b8   : > { %v764_v29 = vadd.f32 %v763_v28, %v706_v27 }
 0x1ba   : > { %790 = vst [vmem:[%s1418_s6 + $0x78] sm:$0xff] %v764_v29 }
 0x1bd   : > { %v708_v30 = vpop.f32.mrf.mxu2 }
 0x1be   : > { %v709_v31 = vadd.f32 %v1410_v18, %v708_v30  ;;  %v766_v32 = vpop.f32.mrf.mxu3 }
 0x1c0   : > { %v767_v14 = vadd.f32 %v766_v32, %v709_v31 }
 0x1c2   : > { %791 = vst [vmem:[%s1418_s6 + $0x80] sm:$0xff] %v767_v14 }
 0x1c5   : > { %v710_v33 = vpop.f32.mrf.mxu2 }
 0x1c6   : > { %v711_v34 = vadd.f32 %v1410_v18, %v710_v33  ;;  %v768_v35 = vpop.f32.mrf.mxu3 }
 0x1c8   : > { %v769_v15 = vadd.f32 %v768_v35, %v711_v34 }
 0x1ca   : > { %792 = vst [vmem:[%s1418_s6 + $0x88] sm:$0xff] %v769_v15 }
 0x1cd   : > { %v713_v36 = vpop.f32.mrf.mxu2 }
 0x1ce   : > { %v714_v37 = vadd.f32 %v1410_v18, %v713_v36  ;;  %v771_v38 = vpop.f32.mrf.mxu3 }
 0x1d0   : > { %v772_v39 = vadd.f32 %v771_v38, %v714_v37 }
 0x1d2   : > { %793 = vst [vmem:[%s1418_s6 + $0x90] sm:$0xff] %v772_v39 }
 0x1d3   : > { %1091 = shalt.err (!%p1088_p3)
}
 0x1d4   : > { %s1128_s7 = smov 128   ;;  %s1129_s30 = smov 8  }
 0x1d5   : > { %1022 = dma.vmem_to_hbm [thread:$0]  (%p1198_p5), %s808_s12, 2432, %s810_s13, %s795_s22, %s1128_s7, %s1128_s7, %s1129_s30   ;;  %v715_v18 = vpop.f32.mrf.mxu2 }
 0x1d6   : > { %v773_v40 = vpop.f32.mrf.mxu3 }
 0x1d7 PF: > { %p1028_p4 = scmp.ge.s32.totalorder %s1126_s21, 2  ;;  %s824_s6 = sand.u32 1, %s1114_s18  }
 0x1d8   : > { %s825_s8 = scalar_lea.sflag [#allocation3], %s824_s6 }
 0x1d9   : > { %p1025_p7 = pnand %p1028_p4, %p1202_p6 }
 0x1db   : > { %p1026_p8 = pneg %p1025_p7 }
 0x1dd   : > { %1109 = dma.done.wait (%p1026_p8), %s825_s8, 2432  }
 0x1de   : > { %1111 = vsyncadd (%p1026_p8), %s825_s8, 4294964864  ;;  %p15_p5 = scmp.ge.s32.totalorder %s1185_s24, 4   ;;  %s1500_s18 = smov %s1118_s19 }
 0x1df   : > { %s1501_s19 = smov %s1122_s20  ;;  %s1502_s20 = smov %s1196_s27 }
 0x1e0   : > { %s1503_s21 = smov %s1185_s24  ;;  %17 = sbr.rel (!%p15_p5) target bundleno = 3 (0x3), region = 75 }
 0x1e5   :  { %831 = vsyncpa [#allocation3], 1 }
 0x1e6   :  { %833 = vsyncpa [#allocation3 + $0x1], 1 }

</bundles_post_ra>
